<compile_context>
chip_gen: v7x
topology: tpu7x:2x2x1
jax: 0.10.0
libtpu: 0.0.40
codegen_flags: <defaults>
</compile_context>

<pallas_src>
import functools

import jax
import jax.numpy as jnp
from jax import lax
from jax.experimental import pallas as pl
from jax.experimental.pallas import tpu as pltpu


def _hard_sigmoid(x):
    # nn.Hardsigmoid: relu6(x + 3) / 6 == clip(x/6 + 0.5, 0, 1); mul not div.
    return jnp.clip(x * (1.0 / 6.0) + 0.5, 0.0, 1.0)


def _hard_tanh(x):
    # nn.Hardtanh default: clamp to [-1, 1]
    return jnp.clip(x, -1.0, 1.0)


def _round_up(n, m):
    return ((n + m - 1) // m) * m


def qlstm_seq_kernel(wi_ref, h0_ref, c0_ref, whh_ref, b_ref, out_ref,
                     h_st, c_st, bias_st, *, hidden, t_chunk, n_subtiles):
    """One grid step = t_chunk timesteps for one batch tile.

    wi_ref : (t_chunk, Bt, 4H)  precomputed input projection for this chunk
    h0/c0  : (Bt, H)            initial state (read only at chunk 0)
    whh_ref: (H, 4H)            W_hh^T, VMEM-resident (constant index_map)
    b_ref  : (1, 4H)            recurrent bias row (f32)
    out    : (Bt, >=2H)         packed [h_T | c_T | pad], written at last chunk
    h_st/c_st : (Bt, H) f32     VMEM scratch carrying the recurrent state
    bias_st   : (Bt, 4H) f32    bias broadcast, filled once per batch tile
    """
    H = hidden
    tc = pl.program_id(1)
    Bt = h_st.shape[0]
    sub_b = Bt // n_subtiles

    @pl.when(tc == 0)
    def _():
        h_st[...] = h0_ref[...].astype(jnp.float32)
        c_st[...] = c0_ref[...].astype(jnp.float32)
        # Hoisted bias broadcast: done once per batch tile, not per timestep.
        bias_st[...] = jnp.broadcast_to(
            b_ref[...].astype(jnp.float32), bias_st.shape)

    # Hoist loop-invariant loads out of the timestep loop.
    w_hh = whh_ref[...]                       # (H, 4H), matmul operand dtype
    mm_dtype = w_hh.dtype
    bias_sub = tuple(bias_st[k * sub_b:(k + 1) * sub_b, :]
                     for k in range(n_subtiles))

    def step(s, carry):
        hs, cs = carry                        # tuples of (sub_b, H) f32
        # All sub-tile matmuls are independent of each other -> the scheduler
        # can overlap one sub-tile's MXU push/drain with the other's VPU
        # gate math (the h-recurrence otherwise fully exposes MXU latency).
        hx4s = tuple(
            jnp.dot(hs[k].astype(mm_dtype), w_hh,
                    preferred_element_type=jnp.float32)
            for k in range(n_subtiles))
        wi_full = wi_ref[s].astype(jnp.float32)   # (Bt, 4H)

        new_h = []
        new_c = []
        for k in range(n_subtiles):
            r0 = k * sub_b
            hx4 = hx4s[k] + wi_full[r0:r0 + sub_b, :] + bias_sub[k]
            # Nonlinearities over the full (sub_b, 4H) tile, then slice gates
            # in module order (f, i, o, g).
            sg = _hard_sigmoid(hx4)
            th = _hard_tanh(hx4)
            f = sg[:, 0 * H:1 * H]
            i = sg[:, 1 * H:2 * H]
            o = sg[:, 2 * H:3 * H]
            g = th[:, 3 * H:4 * H]
            c1 = f * cs[k] + i * g            # f32 state across timesteps
            h1 = o * _hard_tanh(c1)
            new_h.append(h1)
            new_c.append(c1)
        return tuple(new_h), tuple(new_c)

    init_h = tuple(h_st[k * sub_b:(k + 1) * sub_b, :] for k in range(n_subtiles))
    init_c = tuple(c_st[k * sub_b:(k + 1) * sub_b, :] for k in range(n_subtiles))
    hs, cs = lax.fori_loop(0, t_chunk, step, (init_h, init_c), unroll=True)

    for k in range(n_subtiles):
        h_st[k * sub_b:(k + 1) * sub_b, :] = hs[k]
        c_st[k * sub_b:(k + 1) * sub_b, :] = cs[k]

    @pl.when(tc == pl.num_programs(1) - 1)
    def _():
        h_fin = h_st[...]
        c_fin = c_st[...]
        pad = out_ref.shape[1] - 2 * H
        parts = [h_fin, c_fin]
        if pad > 0:
            parts.append(jnp.zeros((Bt, pad), jnp.float32))
        # One lane-dense full-width store.
        out_ref[...] = jnp.concatenate(parts, axis=1).astype(out_ref.dtype)


def qlstm_seq(x_seq, h0, c0, w_ih_t, w_hh_t, bias_row, *, block_b=None,
              t_chunk=None, n_subtiles=None, matmul_dtype=None,
              out_dtype=None, vmem_limit_bytes=None):
    """Run T LSTM-cell steps in a single pallas_call; returns (h_T, c_T).

    x_seq    : (T, B, I)
    h0, c0   : (B, H)
    w_ih_t   : (I, 4H)   = W_ih^T   (input->hidden, bias-free)
    w_hh_t   : (H, 4H)   = W_hh^T   (hidden->hidden)
    bias_row : (1, 4H)   h_to_h bias (zeros when use_bias=False)
    matmul_dtype : e.g. jnp.bfloat16 to feed the MXU bf16 operands (valid on
                   v5e, v6e and v7x); state and gate math stay f32.
    vmem_limit_bytes : raise the scoped VMEM limit for large H (v5e default is
                   16 MiB; v7x physical VMEM is 64 MiB/TC -- use bf16 weights).
    """
    T, B, I = x_seq.shape
    H = h0.shape[1]
    assert w_ih_t.shape == (I, 4 * H)
    assert w_hh_t.shape == (H, 4 * H)
    out_dtype = out_dtype or h0.dtype

    # --- tiling choices -----------------------------------------------------
    if block_b is None:
        # Give the "parallel" batch axis >=2 tiles when the batch allows (v7x
        # second TensorCore); keep each tile a sublane-aligned row count
        # (multiple of 8 for f32 operands, 16 for bf16).
        row_mult = 16 if matmul_dtype == jnp.bfloat16 else 8
        if B >= 2 * row_mult and (B // 2) % row_mult == 0:
            block_b = B // 2
        else:
            block_b = B
    assert B % block_b == 0, "batch must be divisible by block_b"

    if n_subtiles is None:
        # >=2 independent sub-tiles hide MXU latency behind VPU gate math.
        n_subtiles = 2 if (block_b >= 16 and block_b % 16 == 0) else 1
    assert block_b % n_subtiles == 0

    if t_chunk is None:
        t_chunk = next(d for d in (8, 4, 2, 1) if T % d == 0)
    assert T % t_chunk == 0, "seq length must be divisible by t_chunk"

    # --- hoist the input projection out of the serial recurrence -------------
    # One MXU-efficient (T*B, I) x (I, 4H) matmul (plain XLA), streamed per
    # timestep chunk; only h @ W_hh^T (K=H) stays inside the serial loop.
    if matmul_dtype is not None:
        wi_seq = jnp.einsum('tbi,if->tbf',
                            x_seq.astype(matmul_dtype),
                            w_ih_t.astype(matmul_dtype),
                            preferred_element_type=jnp.float32)
        wi_seq = wi_seq.astype(matmul_dtype)   # halve streamed bytes per step
        w_hh_mm = w_hh_t.astype(matmul_dtype)
    else:
        wi_seq = jnp.einsum('tbi,if->tbf', x_seq, w_ih_t,
                            preferred_element_type=jnp.float32,
                            precision=lax.Precision.HIGHEST)
        w_hh_mm = w_hh_t
    bias_row = bias_row.astype(jnp.float32)

    out_w = _round_up(2 * H, 128)   # lane-dense packed [h | c | pad] output
    kernel = functools.partial(qlstm_seq_kernel, hidden=H, t_chunk=t_chunk,
                               n_subtiles=n_subtiles)

    compiler_kwargs = dict(dimension_semantics=("parallel", "arbitrary"))
    if vmem_limit_bytes is not None:
        compiler_kwargs["vmem_limit_bytes"] = vmem_limit_bytes

    packed = pl.pallas_call(
        kernel,
        out_shape=jax.ShapeDtypeStruct((B, out_w), out_dtype),
        grid_spec=pltpu.PrefetchScalarGridSpec(
            num_scalar_prefetch=0,
            grid=(B // block_b, T // t_chunk),   # (batch tiles, time chunks)
            in_specs=[
                # streamed input-projection chunk
                pl.BlockSpec((t_chunk, block_b, 4 * H),
                             lambda bi, tc: (tc, bi, 0)),
                pl.BlockSpec((block_b, H), lambda bi, tc: (bi, 0)),
                pl.BlockSpec((block_b, H), lambda bi, tc: (bi, 0)),
                # constant index_maps -> W_hh / bias stay resident in VMEM
                pl.BlockSpec((H, 4 * H), lambda bi, tc: (0, 0)),
                pl.BlockSpec((1, 4 * H), lambda bi, tc: (0, 0)),
            ],
            out_specs=pl.BlockSpec((block_b, out_w), lambda bi, tc: (bi, 0)),
            scratch_shapes=[
                pltpu.VMEM((block_b, H), jnp.float32),        # h state
                pltpu.VMEM((block_b, H), jnp.float32),        # c state
                pltpu.VMEM((block_b, 4 * H), jnp.float32),    # bias broadcast
            ],
        ),
        compiler_params=pltpu.CompilerParams(**compiler_kwargs),
    )(wi_seq, h0, c0, w_hh_mm, bias_row)

    return packed[:, 0:H], packed[:, H:2 * H]


def qlstm_cell(x, h0, c0, w_ih_t, w_hh_t, bias_row, **kw):
    """Single-step QLSTMCell.forward equivalent: (x,(h0,c0)) -> (h1, c1)."""
    return qlstm_seq(x[None], h0, c0, w_ih_t, w_hh_t, bias_row, **kw)


def _orthogonal(key, rows, cols):
    """PyTorch-style orthogonal init for a (rows, cols) matrix."""
    flat = jax.random.normal(key, (max(rows, cols), min(rows, cols)),
                             dtype=jnp.float32)
    q, r = jnp.linalg.qr(flat)
    d = jnp.diagonal(r)
    q = q * jnp.where(d >= 0, 1.0, -1.0)[None, :]
    if rows < cols:
        q = q.T
    return q


def init_params(key, input_size, hidden_size, use_bias=True):
    """Parameter init mirroring the module's reset_parameters.

    i_to_h.weight : (4H, I), orthogonal init
    h_to_h.weight : (4H, H), keeps default Linear init (the module's
                    `self.h_to_h.data = ...` does NOT overwrite the weight)
    h_to_h.bias   : (4H,), zeros
    Returned transposed for the kernel:
      w_ih_t (I, 4H), w_hh_t (H, 4H), bias_row (1, 4H)
    """
    k1, k2 = jax.random.split(key)
    w_ih = _orthogonal(k1, 4 * hidden_size, input_size)        # (4H, I)

    bound = 1.0 / jnp.sqrt(jnp.float32(hidden_size))
    w_hh = jax.random.uniform(k2, (4 * hidden_size, hidden_size),
                              dtype=jnp.float32, minval=-bound, maxval=bound)

    b_hh = jnp.zeros((4 * hidden_size,), dtype=jnp.float32)    # zeros either way
    return w_ih.T, w_hh.T, b_hh.reshape(1, 4 * hidden_size)


def reference_seq(x_seq, h0, c0, w_ih_t, w_hh_t, bias_row):
    """Pure-JAX f32 reference of the same math, step by step."""
    H = h0.shape[1]
    hp = lax.Precision.HIGHEST
    h = h0.astype(jnp.float32)
    c = c0.astype(jnp.float32)
    for t in range(x_seq.shape[0]):
        wi = jnp.dot(x_seq[t].astype(jnp.float32), w_ih_t, precision=hp)
        wh_b = jnp.dot(h, w_hh_t, precision=hp) + bias_row
        hx4 = wh_b + wi
        f = hx4[:, 0 * H:1 * H]
        i = hx4[:, 1 * H:2 * H]
        o = hx4[:, 2 * H:3 * H]
        g = hx4[:, 3 * H:4 * H]
        c = _hard_sigmoid(f) * c + _hard_sigmoid(i) * _hard_tanh(g)
        h = _hard_sigmoid(o) * _hard_tanh(c)
    return h, c


if __name__ == "__main__":
    batch = 16
    input_size = 16
    hidden_size = 32
    seq_len = 12

    key = jax.random.PRNGKey(0)
    kx, kh, kc, kp = jax.random.split(key, 4)

    x_seq = jax.random.normal(kx, (seq_len, batch, input_size), dtype=jnp.float32)
    h0 = jax.random.normal(kh, (batch, hidden_size), dtype=jnp.float32)
    c0 = jax.random.normal(kc, (batch, hidden_size), dtype=jnp.float32)
    w_ih_t, w_hh_t, bias_row = init_params(kp, input_size, hidden_size,
                                           use_bias=True)

    # 1) Single-step cell semantics (matches QLSTMCell.forward), f32.
    h1, c1 = qlstm_cell(x_seq[0], h0, c0, w_ih_t, w_hh_t, bias_row)
    jax.block_until_ready((h1, c1))
    h1_r, c1_r = reference_seq(x_seq[:1], h0, c0, w_ih_t, w_hh_t, bias_row)
    assert jnp.allclose(h1, h1_r, atol=1e-4, rtol=1e-4)
    assert jnp.allclose(c1, c1_r, atol=1e-4, rtol=1e-4)

    hT_r, cT_r = reference_seq(x_seq, h0, c0, w_ih_t, w_hh_t, bias_row)

    # 2) Full sequence, default tiling (2 batch tiles x timestep chunks), f32.
    hT, cT = qlstm_seq(x_seq, h0, c0, w_ih_t, w_hh_t, bias_row)
    jax.block_until_ready((hT, cT))
    assert jnp.allclose(hT, hT_r, atol=1e-4, rtol=1e-4)
    assert jnp.allclose(cT, cT_r, atol=1e-4, rtol=1e-4)

    # 3) Explicit chunking + 2 batch sub-tiles inside the timestep loop, f32.
    hT2, cT2 = qlstm_seq(x_seq, h0, c0, w_ih_t, w_hh_t, bias_row,
                         block_b=16, t_chunk=4, n_subtiles=2)
    jax.block_until_ready((hT2, cT2))
    assert jnp.allclose(hT2, hT_r, atol=1e-4, rtol=1e-4)
    assert jnp.allclose(cT2, cT_r, atol=1e-4, rtol=1e-4)

    # 4) bf16 MXU-operand path (valid on v5e/v6e/v7x); state/gate math stay f32.
    hT_b, cT_b = qlstm_seq(x_seq, h0, c0, w_ih_t, w_hh_t, bias_row,
                           matmul_dtype=jnp.bfloat16)
    jax.block_until_ready((hT_b, cT_b))
    assert jnp.max(jnp.abs(hT_b - hT_r)) < 1e-1
    assert jnp.max(jnp.abs(cT_b - cT_r)) < 1e-1

    print("KERNEL_OK")
</pallas_src>

<mosaic_0001>
module attributes {stable_mosaic.version = 11 : i64} {
  func.func @qlstm_seq_kernel(%arg0: i32, %arg1: i32, %arg2: memref<1x8x128xf32, #tpu.memory_space<vmem>>, %arg3: memref<8x32xf32, #tpu.memory_space<vmem>>, %arg4: memref<8x32xf32, #tpu.memory_space<vmem>>, %arg5: memref<32x128xf32, #tpu.memory_space<vmem>>, %arg6: memref<1x128xf32, #tpu.memory_space<vmem>>, %arg7: memref<8x128xf32, #tpu.memory_space<vmem>>, %arg8: memref<8x32xf32, #tpu.memory_space<vmem>>, %arg9: memref<8x32xf32, #tpu.memory_space<vmem>>, %arg10: memref<8x128xf32, #tpu.memory_space<vmem>>) attributes {dimension_semantics = [#tpu.dimension_semantics<parallel>, #tpu.dimension_semantics<arbitrary>], iteration_bounds = array<i64: 2, 1>, scalar_prefetch = 0 : i64, scratch_operands = 3 : i64, tpu.core_type = #tpu.core_type<tc>, window_params = [{transform_indices = @transform_0, window_bounds = array<i64: 1, 8, 128>}, {transform_indices = @transform_1, window_bounds = array<i64: 8, 32>}, {transform_indices = @transform_2, window_bounds = array<i64: 8, 32>}, {pipeline_mode = #tpu.pipeline_mode<synchronous>, transform_indices = @transform_3, window_bounds = array<i64: 32, 128>}, {pipeline_mode = #tpu.pipeline_mode<synchronous>, transform_indices = @transform_4, window_bounds = array<i64: 1, 128>}, {transform_indices = @transform_5, window_bounds = array<i64: 8, 128>}]} {
    %c0_i32 = arith.constant 0 : i32
    %0 = arith.cmpi eq, %arg1, %c0_i32 : i32
    %1 = arith.extui %0 : i1 to i32
    %c0_i32_0 = arith.constant 0 : i32
    %2 = arith.cmpi ne, %1, %c0_i32_0 : i32
    scf.if %2 {
      %c0_25 = arith.constant 0 : index
      %c0_26 = arith.constant 0 : index
      %42 = vector.load %arg3[%c0_25, %c0_26] : memref<8x32xf32, #tpu.memory_space<vmem>>, vector<8x32xf32>
      %c0_27 = arith.constant 0 : index
      %c0_28 = arith.constant 0 : index
      %43 = vector.load %arg8[%c0_27, %c0_28] : memref<8x32xf32, #tpu.memory_space<vmem>>, vector<8x32xf32>
      tpu.vector_store %arg8[%c0_27, %c0_28], %42 {strides = array<i32>} : memref<8x32xf32, #tpu.memory_space<vmem>>, vector<8x32xf32>,
      %c0_29 = arith.constant 0 : index
      %c0_30 = arith.constant 0 : index
      %44 = vector.load %arg4[%c0_29, %c0_30] : memref<8x32xf32, #tpu.memory_space<vmem>>, vector<8x32xf32>
      %c0_31 = arith.constant 0 : index
      %c0_32 = arith.constant 0 : index
      %45 = vector.load %arg9[%c0_31, %c0_32] : memref<8x32xf32, #tpu.memory_space<vmem>>, vector<8x32xf32>
      tpu.vector_store %arg9[%c0_31, %c0_32], %44 {strides = array<i32>} : memref<8x32xf32, #tpu.memory_space<vmem>>, vector<8x32xf32>,
      %c0_33 = arith.constant 0 : index
      %c0_34 = arith.constant 0 : index
      %46 = vector.load %arg6[%c0_33, %c0_34] : memref<1x128xf32, #tpu.memory_space<vmem>>, vector<1x128xf32>
      %47 = vector.shape_cast %46 : vector<1x128xf32> to vector<1x128xf32>
      %48 = vector.broadcast %47 : vector<1x128xf32> to vector<8x128xf32>
      %c0_35 = arith.constant 0 : index
      %c0_36 = arith.constant 0 : index
      %49 = vector.load %arg10[%c0_35, %c0_36] : memref<8x128xf32, #tpu.memory_space<vmem>>, vector<8x128xf32>
      tpu.vector_store %arg10[%c0_35, %c0_36], %48 {strides = array<i32>} : memref<8x128xf32, #tpu.memory_space<vmem>>, vector<8x128xf32>,
    } else {
    }
    %c0 = arith.constant 0 : index
    %c0_1 = arith.constant 0 : index
    %3 = vector.load %arg5[%c0, %c0_1] : memref<32x128xf32, #tpu.memory_space<vmem>>, vector<32x128xf32>
    %c0_2 = arith.constant 0 : index
    %c0_3 = arith.constant 0 : index
    %4 = vector.load %arg10[%c0_2, %c0_3] : memref<8x128xf32, #tpu.memory_space<vmem>>, vector<8x128xf32>
    %c0_4 = arith.constant 0 : index
    %c0_5 = arith.constant 0 : index
    %5 = vector.load %arg8[%c0_4, %c0_5] : memref<8x32xf32, #tpu.memory_space<vmem>>, vector<8x32xf32>
    %c0_6 = arith.constant 0 : index
    %c0_7 = arith.constant 0 : index
    %6 = vector.load %arg9[%c0_6, %c0_7] : memref<8x32xf32, #tpu.memory_space<vmem>>, vector<8x32xf32>
    %c0_i32_8 = arith.constant 0 : i32
    %cst = arith.constant dense<0.000000e+00> : vector<8x128xf32>
    %7 = tpu.matmul %5, %3, %cst {dimension_numbers = #tpu.dot_dimension_numbers<[1], [0], [0], [1], [0, 0, 1, 1], [], []>} : vector<8x32xf32>, vector<32x128xf32>, vector<8x128xf32> -> vector<8x128xf32>
    %8 = arith.index_cast %c0_i32_8 : i32 to index
    %c0_9 = arith.constant 0 : index
    %c0_10 = arith.constant 0 : index
    %9 = vector.load %arg2[%8, %c0_9, %c0_10] : memref<1x8x128xf32, #tpu.memory_space<vmem>>, vector<1x8x128xf32>
    %10 = vector.shape_cast %9 : vector<1x8x128xf32> to vector<8x128xf32>
    %11 = arith.addf %7, %10 : vector<8x128xf32>
    %12 = arith.addf %11, %4 : vector<8x128xf32>
    %cst_11 = arith.constant 0.166666672 : f32
    %13 = vector.broadcast %cst_11 : f32 to vector<8x128xf32>
    %14 = arith.mulf %12, %13 : vector<8x128xf32>
    %cst_12 = arith.constant 5.000000e-01 : f32
    %15 = vector.broadcast %cst_12 : f32 to vector<8x128xf32>
    %16 = arith.addf %14, %15 : vector<8x128xf32>
    %cst_13 = arith.constant 0.000000e+00 : f32
    %cst_14 = arith.constant 1.000000e+00 : f32
    %17 = vector.broadcast %cst_13 : f32 to vector<8x128xf32>
    %18 = arith.maximumf %17, %16 : vector<8x128xf32>
    %19 = vector.broadcast %cst_14 : f32 to vector<8x128xf32>
    %20 = arith.minimumf %19, %18 : vector<8x128xf32>
    %cst_15 = arith.constant -1.000000e+00 : f32
    %cst_16 = arith.constant 1.000000e+00 : f32
    %21 = vector.broadcast %cst_15 : f32 to vector<8x128xf32>
    %22 = arith.maximumf %21, %12 : vector<8x128xf32>
    %23 = vector.broadcast %cst_16 : f32 to vector<8x128xf32>
    %24 = arith.minimumf %23, %22 : vector<8x128xf32>
    %25 = vector.extract_strided_slice %20 {offsets = [0, 0], sizes = [8, 32], strides = [1, 1]} : vector<8x128xf32> to vector<8x32xf32>
    %26 = vector.extract_strided_slice %20 {offsets = [0, 32], sizes = [8, 32], strides = [1, 1]} : vector<8x128xf32> to vector<8x32xf32>
    %27 = vector.extract_strided_slice %20 {offsets = [0, 64], sizes = [8, 32], strides = [1, 1]} : vector<8x128xf32> to vector<8x32xf32>
    %28 = vector.extract_strided_slice %24 {offsets = [0, 96], sizes = [8, 32], strides = [1, 1]} : vector<8x128xf32> to vector<8x32xf32>
    %29 = arith.mulf %25, %6 : vector<8x32xf32>
    %30 = arith.mulf %26, %28 : vector<8x32xf32>
    %31 = arith.addf %29, %30 : vector<8x32xf32>
    %cst_17 = arith.constant -1.000000e+00 : f32
    %cst_18 = arith.constant 1.000000e+00 : f32
    %32 = vector.broadcast %cst_17 : f32 to vector<8x32xf32>
    %33 = arith.maximumf %32, %31 : vector<8x32xf32>
    %34 = vector.broadcast %cst_18 : f32 to vector<8x32xf32>
    %35 = arith.minimumf %34, %33 : vector<8x32xf32>
    %36 = arith.mulf %27, %35 : vector<8x32xf32>
    %c1_i32 = arith.constant 1 : i32
    %c0_19 = arith.constant 0 : index
    %c0_20 = arith.constant 0 : index
    %37 = vector.load %arg8[%c0_19, %c0_20] : memref<8x32xf32, #tpu.memory_space<vmem>>, vector<8x32xf32>
    tpu.vector_store %arg8[%c0_19, %c0_20], %36 {strides = array<i32>} : memref<8x32xf32, #tpu.memory_space<vmem>>, vector<8x32xf32>,
    %c0_21 = arith.constant 0 : index
    %c0_22 = arith.constant 0 : index
    %38 = vector.load %arg9[%c0_21, %c0_22] : memref<8x32xf32, #tpu.memory_space<vmem>>, vector<8x32xf32>
    tpu.vector_store %arg9[%c0_21, %c0_22], %31 {strides = array<i32>} : memref<8x32xf32, #tpu.memory_space<vmem>>, vector<8x32xf32>,
    %c0_i32_23 = arith.constant 0 : i32
    %39 = arith.cmpi eq, %arg1, %c0_i32_23 : i32
    %40 = arith.extui %39 : i1 to i32
    %c0_i32_24 = arith.constant 0 : i32
    %41 = arith.cmpi ne, %40, %c0_i32_24 : i32
    scf.if %41 {
      %c0_25 = arith.constant 0 : index
      %c0_26 = arith.constant 0 : index
      %42 = vector.load %arg8[%c0_25, %c0_26] : memref<8x32xf32, #tpu.memory_space<vmem>>, vector<8x32xf32>
      %c0_27 = arith.constant 0 : index
      %c0_28 = arith.constant 0 : index
      %43 = vector.load %arg9[%c0_27, %c0_28] : memref<8x32xf32, #tpu.memory_space<vmem>>, vector<8x32xf32>
      %cst_29 = arith.constant 0.000000e+00 : f32
      %44 = vector.broadcast %cst_29 : f32 to vector<8x64xf32>
      %45 = tpu.concatenate %42, %43, %44 in 1 : vector<8x32xf32>, vector<8x32xf32>, vector<8x64xf32> -> vector<8x128xf32>
      %c0_30 = arith.constant 0 : index
      %c0_31 = arith.constant 0 : index
      %46 = vector.load %arg7[%c0_30, %c0_31] : memref<8x128xf32, #tpu.memory_space<vmem>>, vector<8x128xf32>
      tpu.vector_store %arg7[%c0_30, %c0_31], %45 {strides = array<i32>} : memref<8x128xf32, #tpu.memory_space<vmem>>, vector<8x128xf32>,
    } else {
    }
    return
  }
  func.func @transform_0(%arg0: i32, %arg1: i32) -> (i32, i32, i32) {
    %c0_i32 = arith.constant 0 : i32
    %c0_i32_0 = arith.constant 0 : i32
    return %arg1, %arg0, %c0_i32 : i32, i32, i32
  }
  func.func @transform_1(%arg0: i32, %arg1: i32) -> (i32, i32) {
    %c0_i32 = arith.constant 0 : i32
    %c0_i32_0 = arith.constant 0 : i32
    return %arg0, %c0_i32 : i32, i32
  }
  func.func @transform_2(%arg0: i32, %arg1: i32) -> (i32, i32) {
    %c0_i32 = arith.constant 0 : i32
    %c0_i32_0 = arith.constant 0 : i32
    return %arg0, %c0_i32 : i32, i32
  }
  func.func @transform_3(%arg0: i32, %arg1: i32) -> (i32, i32) {
    %c0_i32 = arith.constant 0 : i32
    %c0_i32_0 = arith.constant 0 : i32
    %c0_i32_1 = arith.constant 0 : i32
    return %c0_i32, %c0_i32_0 : i32, i32
  }
  func.func @transform_4(%arg0: i32, %arg1: i32) -> (i32, i32) {
    %c0_i32 = arith.constant 0 : i32
    %c0_i32_0 = arith.constant 0 : i32
    %c0_i32_1 = arith.constant 0 : i32
    return %c0_i32, %c0_i32_0 : i32, i32
  }
  func.func @transform_5(%arg0: i32, %arg1: i32) -> (i32, i32) {
    %c0_i32 = arith.constant 0 : i32
    %c0_i32_0 = arith.constant 0 : i32
    return %arg0, %c0_i32 : i32, i32
  }
}

</mosaic_0001>

<bundles_post_ra>
// kernel: tpu_custom_call.1
= control target key start
LH: loop header
LB: loop body
LE: loop exit
PB: predicated region body
PF: predicated region fallthrough
CT: control target
= control target key end

     0   :  { %s1331_s0 = inlined_call_operand.hbm [shape: f32[1,16,128], index: 0, kind: input, shape index: {}]   ;;  %s1332_s1 = inlined_call_operand.hbm [shape: f32[16,32], index: 1, kind: input, shape index: {}]   ;;  %s1333_s2 = inlined_call_operand.hbm [shape: f32[16,32], index: 2, kind: input, shape index: {}]   ;;  %s1334_s3 = inlined_call_operand.hbm [shape: f32[32,128], index: 3, kind: input, shape index: {}]   ;;  %s1335_s4 = inlined_call_operand.vmem [shape: f32[1,128], index: 4, kind: input, shape index: {}]   ;;  %s1336_s5 = inlined_call_operand.hbm [shape: f32[16,128], index: 5, kind: output, shape index: {}]  }
   0x1   :  { %1356 = sst [smem:[#allocation25_spill]] %s1332_s1 }
   0x2   :  { %1357 = sst [smem:[#allocation26_spill]] %s1336_s5 }
   0x3   :  { %10 = vsyncpa [#allocation6], 0 }
   0x4   :  { %12 = vsyncpa [#allocation6 + $0x1], 0 }
   0x5   :  { %13 = vsyncpa [#allocation9], 0 }
   0x6   :  { %15 = vsyncpa [#allocation9 + $0x1], 0 }
   0x7   :  { %16 = vsyncpa [#allocation12], 0 }
   0x8   :  { %17 = vsyncpa [#allocation7], 0 }
   0x9   :  { %19 = vsyncpa [#allocation7 + $0x1], 0  ;;  %s1023_s18 = smov 0   ;;  %s1025_s19 = smov 0  }
   0xa   :  { %s1027_s20 = smov 0   ;;  %s1029_s21 = smov 0  }
   0xb   :  { %s1031_s22 = smov 0   ;;  %s1033_s23 = smov 0  }
   0xc LB: > { %1358 = sst [smem:[#allocation18_spill]] %s958_s18  ;;  %s37_s24 = sadd.s32 1, %s974_s22  ;;  %s978_s23 = sphi %s1033_s23, %s25_s23   ;;  %s974_s22 = sphi %s1031_s22, %s1396_s22   ;;  %s970_s21 = sphi %s1029_s21, %s1391_s21   ;;  %s966_s20 = sphi %s1027_s20, %s1395_s20   ;;  %s962_s19 = sphi %s1025_s19, %s1394_s19   ;;  %s958_s18 = sphi %s1023_s18, %s1393_s18  }
   0xd   : > { %1359 = sst [smem:[#allocation19_spill]] %s974_s22  ;;  %s46_s25 = sadd.s32 1, %s966_s20 }
   0xe   : > { %1360 = sst [smem:[#allocation20_spill]] %s978_s23  ;;  %p39_p0 = scmp.ge.s32.totalorder %s37_s24, 2 }
   0xf   : > { %p1337_p1 = scmp.ne.s32.totalorder %s966_s20, %s962_s19  ;;  %p54_p2 = scmp.eq.s32.totalorder %s978_s23, 0 }
  0x10   : > { %s1398_s24 = smov (%p39_p0, %s37_s24), 0  ;;  %p710_p5 = scmp.lt.s32.totalorder %s978_s23, 2 }
  0x11   : > { %1361 = sst [smem:[#allocation21_spill]] %s1398_s24  ;;  %p55_p4 = por %p54_p2, %p1337_p1 }
  0x12   : > { %s42_s26 = ssub.s32 %s974_s22, %s1398_s24  ;;  %s1338_s27 = sand.u32 1, %s966_s20  }
  0x13   : > { %p44_p6 = scmp.eq.s32.totalorder %s42_s26, 0  ;;  %s1070_s28 = sshll.u32 %s1338_s27, 3 }
  0x14   : > { %s1073_s29 = sshll.u32 %s974_s22, 7  ;;  %p1075_p7 = pnand %p710_p5, %p55_p4 }
  0x15   : > { %s1080_s6 = scalar_select %p44_p6, %s966_s20, %s46_s25  }
  0x16   : > { %s1362_s30 = scalar_select %p1075_p7, 1, 0 }
  0x17   : > { %1363 = sst [smem:[#allocation22_spill]] %s1080_s6  ;;  %s239_s7 = sand.u32 1, %s978_s23  }
  0x18   : > { %s1364_s1 = sld [smem:[#allocation25_spill]]  ;;  %s243_s11 = scalar_lea.vmem [#allocation8], %s1070_s28 }
  0x19   : > { %s250_s12 = sshll.u32 %s243_s11, 4  ;;  %s1092_s13 = scalar_lea.sflag [#allocation9], %s239_s7  ;;  %s1090_s12 = int_to_ptr.vmem [resolvable:$true] %s250_s12 }
  0x1a   : > { %p1098_p9 = pneg %p1075_p7 }
  0x1c   : > { %s1365_s15 = scalar_select %p1098_p9, 1, 0 }
  0x1e   : > { %s1087_s10 = scalar_lea.hbm %s1364_s1, %s1073_s29  ;;  %s775_s25 = scalar_lea.hbm %s1364_s1, 256 }
  0x1f   : > { %s770_s14 = scalar_lea.hbm %s1087_s10, 128  ;;  %p776_p12 = scmp.lt.u32.totalorder %s1087_s10, %s1364_s1 }
  0x20   : > { %p771_p8 = scmp.ne.s32.totalorder %s1087_s10, %s770_s14  ;;  %p777_p13 = scmp.lt.u32.totalorder %s775_s25, %s770_s14 }
  0x21   : > { %p779_p2 = scmp.lt.u32.totalorder %s770_s14, %s1087_s10 }
  0x22   : > { %p773_p10 = pnand %p1098_p9, %p771_p8  ;;  %p778_p0 = por %p777_p13, %p776_p12 }
  0x24   : > { %p774_p11 = pneg %p773_p10  ;;  %p780_p4 = por %p779_p2, %p778_p0 }
  0x26   : > { %p781_p5 = pnand %p780_p4, %p774_p11 }
  0x28   : > { %784 = shalt.err (!%p781_p5)
}
  0x29   : > { %s785_s7 = scalar_lea.vmem %s1090_s12, 128  ;;  %s980_s9 = smov [#allocation8]  }
  0x2a   : > { %p786_p6 = scmp.ne.s32.totalorder %s1090_s12, %s785_s7  ;;  %s790_s11 = sshll.u32 %s980_s9, 4  ;;  %s791_s11 = int_to_ptr.vmem [resolvable:$false] %s790_s11 }
  0x2b   : > { %s792_s16 = scalar_lea.vmem %s791_s11, 256  ;;  %p793_p3 = scmp.lt.s32.totalorder %s1090_s12, %s791_s11 }
  0x2c   : > { %p788_p8 = pnand %p786_p6, %p1098_p9  ;;  %p794_p1 = scmp.lt.s32.totalorder %s792_s16, %s785_s7 }
  0x2e   : > { %p789_p10 = pneg %p788_p8  ;;  %p795_p12 = por %p794_p1, %p793_p3 }
  0x30   : > { %p796_p13 = pnand %p795_p12, %p789_p10 }
  0x32   : > { %799 = shalt.err (!%p796_p13)
}
  0x33   : > { %701 = dma.hbm_to_vmem [thread:$0]  (!%p1075_p7), %s1087_s10, 128, %s1090_s12, %s1092_s13  }
  0x34   : > { %s1123_s14 = sadd.s32 4294967295, %s978_s23   ;;  %s633_s17 = sadd.s32 4294967294, %s978_s23  }
  0x35   : > { %p59_p1 = scmp.ne.s32.totalorder %s962_s19, %s958_s18  ;;  %p1343_p3 = scmp.eq.s32.totalorder %s1123_s14, 0 }
  0x36   : > { %p177_p11 = scmp.eq.s32.totalorder %s1123_s14, 1  ;;  %p183_p0 = scmp.eq.s32.totalorder %s633_s17, 1 }
  0x37   : > { %p634_p2 = scmp.ge.s32.totalorder %s978_s23, 1  ;;  %p1133_p4 = por %p1343_p3, %p59_p1 }
  0x38   : > { %p1367_p5 = scmp.ne.s32.totalorder %s966_s20, %s962_s19  ;;  %p1144_p8 = por %p183_p0, %p59_p1 }
  0x39   : > { %s1366_s25 = scalar_select %p1133_p4, 1, 0 }
  0x3a   : > { %p1140_p6 = por %p177_p11, %p1367_p5  ;;  %p190_p10 = scmp.lt.s32.totalorder %s978_s23, 3 }
  0x3b   : > { %s1370_s12 = scalar_select %p1144_p8, 1, 0 }
  0x3c   : > { %s1368_s10 = scalar_select %p1140_p6, 1, 0 }
  0x3d   : > { %1371 = sst [smem:[#allocation24_spill]] %s1370_s12  ;;  %p1149_p12 = pnand %p634_p2, %p190_p10 }
  0x3e   : > { %1369 = sst [smem:[#allocation23_spill]] %s1368_s10  ;;  %s981_s8 = smov [#allocation11]  }
  0x3f   : > { %s1372_s26 = scalar_select %p1149_p12, 1, 0 }
  0x40   : > { %s202_s7 = sshll.u32 %s981_s8, 4  ;;  %p691_p13 = pneg %p1149_p12  ;;  %s1153_s7 = int_to_ptr.vmem [resolvable:$true] %s202_s7 }
  0x41   : > { %s1167_s17 = scalar_lea.hbm %s1331_s0, %s1073_s29  ;;  %s223_s27 = scalar_lea.vmem [#allocation5], %s1070_s28 }
  0x42   : > { %p1159_p11 = pnand %p691_p13, %p1343_p3  ;;  %s232_s1 = sshll.u32 %s223_s27, 4  ;;  %s1170_s1 = int_to_ptr.vmem [resolvable:$true] %s232_s1 }
  0x43   : > { %s800_s22 = scalar_lea.hbm %s1334_s3, 512 }
  0x44   : > { %p801_p1 = scmp.ne.s32.totalorder %s1334_s3, %s800_s22  ;;  %p802_p0 = pneg %p1159_p11 }
  0x45   : > { %p807_p10 = scmp.lt.u32.totalorder %s800_s22, %s1334_s3 }
  0x46   : > { %p803_p2 = pnand %p802_p0, %p801_p1 }
  0x48   : > { %p804_p5 = pneg %p803_p2 }
  0x4a   : > { %p809_p13 = pnand %p807_p10, %p804_p5 }
  0x4c   : > { %812 = shalt.err (!%p809_p13)
}
  0x4d   : > { %s813_s27 = scalar_lea.vmem %s1153_s7, 512  ;;  %p821_p4 = scmp.lt.s32.totalorder %s1153_s7, %s1153_s7 }
  0x4e   : > { %p814_p3 = scmp.ne.s32.totalorder %s1153_s7, %s813_s27  ;;  %p822_p12 = scmp.lt.s32.totalorder %s813_s27, %s813_s27 }
  0x50   : > { %p816_p8 = pnand %p814_p3, %p802_p0  ;;  %p823_p7 = por %p822_p12, %p821_p4 }
  0x52   : > { %p817_p6 = pneg %p816_p8 }
  0x54   : > { %p824_p9 = pnand %p823_p7, %p817_p6 }
  0x56   : > { %827 = shalt.err (!%p824_p9)
}
  0x57   : > { %s982_s23 = smov 128   ;;  %s983_s22 = smov 8  }
  0x58   : > { %694 = dma.hbm_to_vmem [thread:$0]  (!%p1159_p11), %s1334_s3, 512, %s1153_s7, [#allocation12], %s982_s23, %s982_s23, %s983_s22  }
  0x59   : > { %s1374_s8 = sand.u32 1, %s966_s20   ;;  %s828_s16 = scalar_lea.hbm %s1167_s17, 128 }
  0x5a   : > { %s220_s11 = scalar_lea.sflag [#allocation6], %s1374_s8  ;;  %p829_p7 = scmp.ne.s32.totalorder %s1167_s17, %s828_s16 }
  0x5b   : > { %p1375_p9 = scmp.ne.s32.totalorder %s1365_s15, 0  ;;  %s833_s18 = scalar_lea.hbm %s1331_s0, 256 }
  0x5c   : > { %p834_p6 = scmp.lt.u32.totalorder %s1167_s17, %s1331_s0  ;;  %p835_p8 = scmp.lt.u32.totalorder %s833_s18, %s828_s16 }
  0x5d   : > { %p831_p3 = pnand %p829_p7, %p1375_p9  ;;  %p837_p1 = scmp.lt.u32.totalorder %s828_s16, %s1167_s17 }
  0x5e   : > { %p836_p12 = por %p835_p8, %p834_p6 }
  0x5f   : > { %p832_p4 = pneg %p831_p3 }
  0x60   : > { %p838_p0 = por %p837_p1, %p836_p12 }
  0x62   : > { %p839_p11 = pnand %p838_p0, %p832_p4 }
  0x64   : > { %842 = shalt.err (!%p839_p11)
}
  0x65   : > { %s843_s7 = scalar_lea.vmem %s1170_s1, 128  ;;  %s984_s12 = smov [#allocation5]  }
  0x66   : > { %p844_p2 = scmp.ne.s32.totalorder %s1170_s1, %s843_s7  ;;  %s848_s9 = sshll.u32 %s984_s12, 4  ;;  %s849_s9 = int_to_ptr.vmem [resolvable:$false] %s848_s9 }
  0x67   : > { %s850_s5 = scalar_lea.vmem %s849_s9, 256  ;;  %p851_p13 = scmp.lt.s32.totalorder %s1170_s1, %s849_s9 }
  0x68   : > { %p846_p5 = pnand %p844_p2, %p1375_p9  ;;  %p852_p7 = scmp.lt.s32.totalorder %s850_s5, %s843_s7 }
  0x6a   : > { %p847_p10 = pneg %p846_p5  ;;  %p853_p3 = por %p852_p7, %p851_p13 }
  0x6c   : > { %p854_p6 = pnand %p853_p3, %p847_p10 }
  0x6e   : > { %857 = shalt.err (!%p854_p6)
}
  0x6f   : > { %p1376_p4 = scmp.ne.s32.totalorder %s1362_s30, 0  ;;  %s1220_s23 = scalar_lea.hbm %s1333_s2, %s1073_s29 }
  0x70   : > { %s261_s22 = scalar_lea.vmem [#allocation10], %s1070_s28  ;;  %s858_s6 = scalar_lea.hbm %s1220_s23, 128 }
  0x71   : > { %698 = dma.hbm_to_vmem [thread:$0]  (!%p1376_p4), %s1167_s17, 128, %s1170_s1, %s220_s11  }
  0x72   : > { %s268_s24 = sshll.u32 %s261_s22, 4  ;;  %p859_p8 = scmp.ne.s32.totalorder %s1220_s23, %s858_s6  ;;  %s269_s24 = int_to_ptr.vmem [resolvable:$true] %s268_s24 }
  0x73   : > { %s863_s1 = scalar_lea.hbm %s1333_s2, 256  ;;  %p864_p0 = scmp.lt.u32.totalorder %s1220_s23, %s1333_s2 }
  0x74   : > { %p861_p12 = pnand %p859_p8, %p1375_p9  ;;  %p865_p11 = scmp.lt.u32.totalorder %s863_s1, %s858_s6 }
  0x75   : > { %p867_p5 = scmp.lt.u32.totalorder %s858_s6, %s1220_s23 }
  0x76   : > { %p862_p1 = pneg %p861_p12  ;;  %p866_p2 = por %p865_p11, %p864_p0 }
  0x78   : > { %p868_p10 = por %p867_p5, %p866_p2 }
  0x7a   : > { %p869_p13 = pnand %p868_p10, %p862_p1 }
  0x7c   : > { %872 = shalt.err (!%p869_p13)
}
  0x7d   : > { %s873_s28 = scalar_lea.vmem %s269_s24, 128  ;;  %s985_s29 = smov [#allocation10]  }
  0x7e   : > { %p874_p7 = scmp.ne.s32.totalorder %s269_s24, %s873_s28  ;;  %s878_s27 = sshll.u32 %s985_s29, 4  ;;  %s879_s27 = int_to_ptr.vmem [resolvable:$false] %s878_s27 }
  0x7f   : > { %s880_s7 = scalar_lea.vmem %s879_s27, 256  ;;  %p881_p8 = scmp.lt.s32.totalorder %s269_s24, %s879_s27 }
  0x80   : > { %p876_p3 = pnand %p874_p7, %p1375_p9  ;;  %p882_p12 = scmp.lt.s32.totalorder %s880_s7, %s873_s28 }
  0x82   : > { %p877_p6 = pneg %p876_p3  ;;  %p883_p4 = por %p882_p12, %p881_p8 }
  0x84   : > { %p884_p0 = pnand %p883_p4, %p877_p6 }
  0x86   : > { %887 = shalt.err (!%p884_p0)
}
  0x87   : > { %p1377_p11 = scmp.ne.s32.totalorder %s1362_s30, 0  ;;  %p1378_p1 = scmp.ne.s32.totalorder %s1372_s26, 0 }
  0x88   : > { %s1244_s15 = sand.u32 (!%p1378_p1), 1, %s962_s19   ;;  %p1379_p9 = scmp.ne.s32.totalorder (!%p1378_p1), %s1366_s25, 0 }
  0x89   : > { %704 = dma.hbm_to_vmem [thread:$0]  (!%p1377_p11), %s1220_s23, 128, %s269_s24, %s1092_s13  }
  0x8a   : > { %277 = sbr.rel (%p1378_p1) target bundleno = 873 (0x369), region = 40  ;;  %s1247_s12 = sshll.u32 (!%p1378_p1), %s1244_s15, 3 }
  0x8b   : > { %s280_s9 = scalar_lea.sflag (!%p1378_p1), [#allocation6], %s1244_s15  ;;  %s283_s5 = scalar_lea.vmem (!%p1378_p1), [#allocation5], %s1247_s12 }
  0x91   : > { %941 = dma.done.wait (%p1379_p9), %s280_s9, 128  }
  0x92   : > { %943 = vsyncadd (%p1379_p9), %s280_s9, 4294967168  ;;  %s288_s30 = sand.u32 1, %s1123_s14   ;;  %s292_s26 = scalar_lea.vmem [#allocation8], %s1247_s12 }
  0x93   : > { %s289_s13 = scalar_lea.sflag [#allocation9], %s288_s30 }
  0x94   : > { %945 = dma.done.wait (%p1379_p9), %s289_s13, 256  }
  0x95   : > { %947 = vsyncadd (%p1379_p9), %s289_s13, 4294967040  ;;  %s301_s18 = scalar_lea.vmem [#allocation10], %s1247_s12  ;;  %p1380_p4 = scmp.eq.s32.totalorder %s1123_s14, 0 }
  0x97   : > { %949 = dma.done.wait (%p1380_p4), [#allocation12], 512   ;;  %p1381_p2 = pmov %p1380_p4 }
  0x98   : > { %v986_v0 = vmov 0.0|0.0   ;;  %vm987_vm0 = vmmov 0   ;;  %v988_v1 = vmov 0.0   ;;  %vm347_vm1 = vcmask 261120   ;;  %v359_v2 = vld [vmem:[#allocation11] sm:$0xff]  ;;  %v360_v3 = vld [vmem:[#allocation11 + $0x8] sm:$0xff] }
  0x99   : > { %951 = vsyncadd (%p1381_p2), [#allocation12], 4294966784  ;;  %673 = vmatprep.subr.bf16.mxu0 %v986_v0  ;;  %670 = vmatprep.mubr.msk.f32.mxu0 %vm987_vm0, %v988_v1  ;;  %v361_v4 = vld [vmem:[#allocation11 + $0x10] sm:$0xff]  ;;  %v674_v5 = vpack.c.bf16 %v360_v3, %v359_v2  ;;  %v362_v6 = vld [vmem:[#allocation11 + $0x18] sm:$0xff]  ;;  %s989_s10 = smov 64   ;;  %s990_s23 = smov 96  }
  0x9a   : > { %v346_v7 = vld [vmem:[%s292_s26] sm:$0xff]  ;;  %v677_v8 = vpack.c.bf16 %v362_v6, %v361_v4  ;;  %v349_v10 = vld [vmem:[%s301_s18] sm:$0xff]  ;;  %s991_s22 = smov 32   ;;  %s1382_s24 = sld [smem:[#allocation23_spill]]  ;;  %vm482_vm2 = vcmask 523264  }
  0x9b   : > { %348 = vst.msk [vmem:[#allocation2] sm:$0xff] %vm347_vm1, %v346_v7  ;;  %675 = vmatpush3.bf16.msra.mxu0 %v674_v5  ;;  %350 = vst.msk [vmem:[#allocation3] sm:$0xff] %vm347_vm1, %v349_v10  ;;  %v366_v11 = vld [vmem:[%s283_s5] sm:$0xff]  ;;  %v649_v12 = vld [vmem:[%s1335_s4] ss:$0 sm:$0xff]  ;;  %s654_s6 = sshll.u32 %s970_s21, 7 }
  0x9c   : > { %676 = vmatprep.subr.bf16.mxu0 %v986_v0  ;;  %s341_s8 = scalar_lea.vmem [#allocation13], %s1247_s12  ;;  %s1383_s11 = sld [smem:[#allocation26_spill]] }
  0x9d   : > { %s499_s16 = sshll.u32 %s341_s8, 4  ;;  %s486_s21 = scalar_lea.sflag [#allocation7], %s1244_s15  ;;  %s1284_s16 = int_to_ptr.vmem [resolvable:$true] %s499_s16 }
  0x9e   : > { %s888_s29 = scalar_lea.vmem %s1284_s16, 128  ;;  %s992_s27 = smov [#allocation13]  }
  0x9f   : > { %678 = vmatpush3.bf16.msra.mxu0 %v677_v8  ;;  %p889_p5 = scmp.ne.s32.totalorder %s1284_s16, %s888_s29  ;;  %s892_s7 = sshll.u32 %s992_s27, 4  ;;  %s893_s7 = int_to_ptr.vmem [resolvable:$false] %s892_s7 }
  0xa0   : > { %p1384_p10 = scmp.ne.s32.totalorder %s1382_s24, 0  ;;  %s894_s12 = scalar_lea.vmem %s893_s7, 256 }
  0xa1   : > { %p895_p3 = scmp.lt.s32.totalorder %s1284_s16, %s893_s7  ;;  %p896_p6 = scmp.lt.s32.totalorder %s894_s12, %s888_s29 }
  0xa2   : > { %v364_v9 = vld [vmem:[#allocation2] sm:$0xff]  ;;  %v365_v24 = vld [vmem:[#allocation3] sm:$0xff]  ;;  %s1282_s28 = scalar_lea.hbm %s1383_s11, %s654_s6  ;;  %p890_p13 = pnand %p889_p5, %p1384_p10 }
  0xa3   : > { %671 = vmatmul.mubr.msk.f32.vlgmr.msra.gmra.mrb[0].mxu0 %vm347_vm1, %v364_v9  ;;  %p897_p8 = por %p896_p6, %p895_p3 }
  0xa4   : > { %p891_p7 = pneg %p890_p13 }
  0xa6   : > { %p898_p12 = pnand %p897_p8, %p891_p7 }
 0x176   : > { %v437_v13 = vpop.f32.mrb[0].mxu0 }
 0x177   : > { %v438_v14 = vadd.f32 %v437_v13, %v366_v11  ;;  %v672_v15 = vpop.f32.mrb[1].mxu0 }
 0x179   : > { %v441_v16 = vadd.f32 %v649_v12, %v438_v14 }
 0x17b   : > { %v651_v17 = vclamps-f32 %v441_v16, 1.0  ;;  %v442_v18 = vmul.f32 0.16666667, %v441_v16 }
 0x17d   : > { %450 = vrot.lane.b32.xlu0 %v651_v17, %s989_s10  ;;  %v443_v19 = vadd.f32 0.5, %v442_v18 }
 0x17f   : > { %v444_v20 = vmax.f32 %v443_v19, 0.0 }
 0x181   : > { %v445_v21 = vmin.f32 %v444_v20, 1.0 }
 0x183   : > { %v448_v25 = vmul.f32 %v445_v21, %v365_v24 }
 0x1ef   : > { %v451_v22 = vpop.permute.xlu0 %450 }
 0x1f0   : > { %v453_v23 = vmul.f32 %v451_v22, %v445_v21 }
 0x1f2   : > { %455 = vrot.lane.b32.xlu0 %v453_v23, %s990_s23 }
 0x264   : > { %v456_v26 = vpop.permute.xlu0 %455 }
 0x265   : > { %v458_v27 = vadd.f32 %v456_v26, %v448_v25 }
 0x267   : > { %471 = vst.msk [vmem:[#allocation3] sm:$0xff] %vm347_vm1, %v458_v27  ;;  %v652_v28 = vclamps-f32 %v458_v27, 1.0 }
 0x269   : > { %462 = vrot.lane.b32.xlu1 %v652_v28, %s989_s10 }
 0x26e   : > { %v476_v29 = vld [vmem:[#allocation3] sm:$0xff] }
 0x26f   : > { %478 = vrot.lane.b32.xlu0 %v476_v29, %s991_s22 }
 0x2db   : > { %v463_v30 = vpop.permute.xlu1 %462 }
 0x2dc   : > { %v465_v31 = vmul.f32 %v463_v30, %v445_v21 }
 0x2de   : > { %467 = vrot.lane.b32.xlu1 %v465_v31, %s989_s10 }
 0x2e1   : > { %v479_v33 = vpop.permute.xlu0 %478 }
 0x350   : > { %v468_v32 = vpop.permute.xlu1 %467 }
 0x351   : > { %470 = vst.msk [vmem:[#allocation2] sm:$0xff] %vm347_vm1, %v468_v32 }
 0x358   : > { %v475_v34 = vld [vmem:[#allocation2] sm:$0xff] }
 0x359   : > { %v481_v35 = vsel %vm347_vm1, %v475_v34, %v479_v33 }
 0x35a   : > { %v483_v36 = vsel %vm482_vm2, %v481_v35, 0.0 }
 0x35b   : > { %484 = vst [vmem:[%s341_s8] sm:$0xff] %v483_v36 }
 0x35c   : > { %901 = shalt.err (!%p898_p12)
}
 0x35d   : > { %s902_s15 = scalar_lea.hbm %s1282_s28, 128  ;;  %s906_s30 = scalar_lea.hbm %s1383_s11, 256 }
 0x35e   : > { %p903_p0 = scmp.ne.s32.totalorder %s1282_s28, %s902_s15  ;;  %p907_p9 = scmp.lt.u32.totalorder %s1282_s28, %s1383_s11 }
 0x35f   : > { %p908_p4 = scmp.lt.u32.totalorder %s906_s30, %s902_s15  ;;  %p910_p5 = scmp.lt.u32.totalorder %s902_s15, %s1282_s28 }
 0x360   : > { %p904_p11 = pnand %p903_p0, %p1384_p10 }
 0x361   : > { %p909_p2 = por %p908_p4, %p907_p9 }
 0x362   : > { %p905_p1 = pneg %p904_p11 }
 0x363   : > { %p911_p13 = por %p910_p5, %p909_p2 }
 0x365   : > { %p912_p7 = pnand %p911_p13, %p905_p1 }
 0x367   : > { %915 = shalt.err (!%p912_p7)
}
 0x368   : > { %689 = dma.vmem_to_hbm [thread:$0]  (%p1384_p10), %s1284_s16, 128, %s1282_s28, %s486_s21  }
 0x369 PF: > { %s1385_s18 = sld [smem:[#allocation18_spill]]  ;;  %s1386_s14 = sld [smem:[#allocation24_spill]] }
 0x36a   : > { %s1387_s25 = sld [smem:[#allocation20_spill]] }
 0x36f   : > { %s511_s10 = sand.u32 1, %s1385_s18   ;;  %p1388_p3 = scmp.ne.s32.totalorder %s1386_s14, 0 }
 0x370   : > { %p1389_p6 = scmp.ge.s32.totalorder %s1387_s25, 2  ;;  %s512_s23 = scalar_lea.sflag [#allocation7], %s511_s10 }
 0x372   : > { %p706_p8 = pnand %p1389_p6, %p1388_p3 }
 0x374   : > { %953 = dma.done.wait (!%p706_p8), %s512_s23, 128  }
 0x375   : > { %955 = vsyncadd (!%p706_p8), %s512_s23, 4294967168  ;;  %s25_s23 = sadd.s32 1, %s1387_s25   ;;  %s1390_s22 = sld [smem:[#allocation22_spill]] }
 0x376   : > { %p22_p12 = scmp.ge.s32.totalorder %s25_s23, 4   ;;  %s1391_s21 = sld [smem:[#allocation19_spill]] }
 0x377   : > { %s1392_s24 = sld [smem:[#allocation21_spill]]  ;;  %s1393_s18 = smov %s962_s19 }
 0x378   : > { %s1394_s19 = smov %s966_s20  ;;  %24 = sbr.rel (!%p22_p12) target bundleno = 12 (0xc), region = 121 }
 0x37b   : > { %s1395_s20 = smov %s1390_s22 }
 0x37d   : > { %s1396_s22 = smov %s1392_s24 }
 0x37f   :  { %517 = vsyncpa [#allocation6], 1 }
 0x380   :  { %519 = vsyncpa [#allocation6 + $0x1], 1 }
 0x381   :  { %520 = vsyncpa [#allocation9], 1 }
 0x382   :  { %522 = vsyncpa [#allocation9 + $0x1], 1 }
 0x383   :  { %523 = vsyncpa [#allocation12], 1 }
 0x384   :  { %524 = vsyncpa [#allocation7], 1 }
 0x385   :  { %526 = vsyncpa [#allocation7 + $0x1], 1 }

</bundles_post_ra>
